<compile_context>
chip_gen: v5e
topology: v5e:2x2
jax: 0.10.0
libtpu: 0.0.40
codegen_flags: <defaults>
</compile_context>

<pallas_src>
import functools

import numpy as np

import jax
import jax.numpy as jnp
from jax.experimental import pallas as pl
from jax.experimental.pallas import tpu as pltpu


def _fwd_kernel(tok_ref,    # (TB*L, 1)   int32 tokens for this block
                table_ref,  # (A, Dp)     bf16 folded Embedding+ReLU+LayerNorm table
                wconv_ref,  # (K, Dp, Dp) bf16 conv weight (tap, Cin, Cout)
                bconv_ref,  # (1, Dp)     f32 conv bias
                out_ref,    # (TB, Dp)    f32 mean-pooled representation
                *, seq_len, conv_kernel_size):
  L = seq_len
  K = conv_kernel_size
  P = (K - 1) // 2                    # 'same' padding (odd kernels)
  rows = tok_ref.shape[0]             # TB * L
  TB = rows // L
  A, D = table_ref.shape

  # --- aa_embedding + emb_layer_norm_after, pre-folded into `table` ----------
  # Embedding selects one row per token; ReLU + per-row LayerNorm + affine are a
  # pure function of the token id and were applied to the table in the wrapper.
  # dropout_module is identity in eval mode.
  tok = tok_ref[...]                                             # (rows, 1) int32
  onehot = (jax.lax.broadcasted_iota(jnp.int32, (rows, A), 1) == tok
            ).astype(jnp.bfloat16)                               # (rows, A)
  x = jnp.dot(onehot, table_ref[...], preferred_element_type=jnp.float32)
  # x: (rows, D) f32; values are exactly the bf16 table rows.

  # sequence position of each row (rows are (example, position), row-major)
  pos = jax.lax.broadcasted_iota(jnp.int32, (rows, 1), 0) % L    # (rows, 1)

  # --- layer_pre_head: Conv1d(D, D, K, padding='same') + Dropout + ReLU ------
  # K shifted views via XLU roll + sequence-boundary masks, accumulated with K
  # MXU dots into one f32 accumulator (Dp >= 128 after lane padding, so each tap
  # already uses full contraction depth; no (rows, K*Dp) im2col slab).
  acc = bconv_ref[...]                                           # (1, D) f32
  for k in range(K):
    s = P - k                    # right-shift (in sequence positions) for tap k
    xs = x if s == 0 else pltpu.roll(x, shift=s % rows, axis=0)
    valid = (pos >= s) & (pos < L + s)       # zero the 'same'-padding rows
    # roll/mask kept in f32 (v5e has no bf16 VALU); one bf16 cast per tap.
    tap = jnp.where(valid, xs, 0.0).astype(jnp.bfloat16)
    acc = acc + jnp.dot(tap, wconv_ref[k], preferred_element_type=jnp.float32)
  x = jnp.maximum(acc, 0.0)                                      # (rows, D) f32

  # --- AA_embeddings_mean_pooled: mean over the sequence axis ----------------
  # TODO(synk): padding positions are included in the mean, exactly as in the
  # reference module; very long sequences would need a cross-block reduction.
  out_ref[...] = jnp.mean(x.reshape(TB, L, D), axis=1)           # (TB, D) f32


def _fold_embedding_table(w_emb, ln_g, ln_b, eps=1e-12):
  """table[a] = ESM1bLayerNorm(ReLU(w_emb[a])) * gamma + beta, computed in f32."""
  y = jnp.maximum(w_emb.astype(jnp.float32), 0.0)
  mu = jnp.mean(y, axis=-1, keepdims=True)
  yc = y - mu
  var = jnp.mean(yc * yc, axis=-1, keepdims=True)
  return (yc * jax.lax.rsqrt(var + eps) * ln_g.astype(jnp.float32)
          + ln_b.astype(jnp.float32))


def _vmem_budgets():
  """(per-block activation budget, vmem_limit_bytes), generation-aware."""
  try:
    cap = int(pltpu.get_tpu_info().vmem_capacity_bytes)
  except Exception:
    cap = 64 << 20
  if cap >= (100 << 20):            # v5e / v6e class: 128 MiB physical VMEM
    return 24 << 20, 96 << 20
  return 8 << 20, 40 << 20          # v7x class: 64 MiB physical VMEM


def _pick_tile_batch(B, L, A, D, budget_bytes):
  """Largest batch tile dividing B that (a) is a multiple of 8 (or == B), (b) keeps the
  per-block working set under budget, (c) prefers >= 2 grid steps (two TCs on v7x and
  DMA/compute overlap from double-buffering)."""
  cands = sorted({tb for tb in range(8, B + 1, 8) if B % tb == 0} | {B})
  per_example = L * (4 + 2 * A + 14 * D)     # tokens + onehot + f32/bf16 activations
  fitting = [tb for tb in cands if tb * per_example <= budget_bytes] or [min(cands)]
  multi = [tb for tb in fitting if B // tb >= 2]
  return max(multi) if multi else max(fitting)


def augmented_property_predictor(tokens, params, zero_shot_fitness_predictions,
                                 *, conv_kernel_size, tile_batch=None):
  """Wrapper: table folding, lane padding and the tiny head in XLA; the hot path
  (embedding lookup, conv, ReLU, mean pool) in one batch-blocked Pallas call."""
  B, L = tokens.shape
  A, D = params['w_emb'].shape
  T = params['w_head'].shape[1]
  K = conv_kernel_size
  assert K % 2 == 1, "padding='same' path implemented for odd kernel sizes"

  # Lane padding: present all intermediates / the output as a multiple of 128 lanes.
  Dp = max(128, ((D + 127) // 128) * 128)
  pad = Dp - D

  # Fold Embedding + ReLU + ESM1bLayerNorm(eps=1e-12) into one bf16 lookup table.
  table = _fold_embedding_table(params['w_emb'], params['ln_g'], params['ln_b'])
  table = jnp.pad(table, ((0, 0), (0, pad))).astype(jnp.bfloat16)            # (A, Dp)
  w_conv = jnp.pad(params['w_conv'].astype(jnp.float32),
                   ((0, 0), (0, pad), (0, pad))).astype(jnp.bfloat16)        # (K, Dp, Dp)
  b_conv = jnp.pad(params['b_conv'].astype(jnp.float32), ((0, 0), (0, pad)))  # (1, Dp)

  budget, vmem_limit = _vmem_budgets()
  TB = _pick_tile_batch(B, L, A, Dp, budget) if tile_batch is None else tile_batch
  assert B % TB == 0 and (TB % 8 == 0 or TB == B), (B, TB)
  rows_blk = TB * L

  # int tokens, flattened to (rows, 1); the one-hot is built inside the kernel.
  tok_rows = tokens.astype(jnp.int32).reshape(B * L, 1)

  grid = (B // TB,)
  flops = 2 * B * L * (A + K * Dp) * Dp
  bytes_accessed = (B * L * 4                       # tokens
                    + A * Dp * 2 + K * Dp * Dp * 2  # bf16 weights (VMEM-resident)
                    + Dp * 4                        # conv bias
                    + B * Dp * 4)                   # pooled output
  cost = pl.CostEstimate(flops=flops, transcendentals=0, bytes_accessed=bytes_accessed)

  # TODO(synk): on v7x, single-buffer the constant-index weight specs
  # (pipeline_mode=pl.Buffered(1)) and consider CORE_PARALLEL batch sharding once
  # verified on the target toolchain.
  pooled_p = pl.pallas_call(
      functools.partial(_fwd_kernel, seq_len=L, conv_kernel_size=K),
      out_shape=jax.ShapeDtypeStruct((B, Dp), jnp.float32),
      grid=grid,
      in_specs=[
          pl.BlockSpec((rows_blk, 1), lambda i: (i, 0)),    # tokens: blocked over batch
          pl.BlockSpec((A, Dp), lambda i: (0, 0)),          # weights: VMEM-resident
          pl.BlockSpec((K, Dp, Dp), lambda i: (0, 0, 0)),
          pl.BlockSpec((1, Dp), lambda i: (0, 0)),
      ],
      out_specs=pl.BlockSpec((TB, Dp), lambda i: (i, 0)),
      compiler_params=pltpu.CompilerParams(
          dimension_semantics=("parallel",),                # megacore on v7x
          vmem_limit_bytes=int(vmem_limit)),
      cost_estimate=cost,
  )(tok_rows, table, w_conv, b_conv)

  pooled = pooled_p[:, :D]                                  # drop lane padding

  # Tiny (D -> T) head + zero-shot fitness covariate (Linear(1, T, bias=False),
  # weight initialized to 1) — plain XLA, keeps the kernel output lane-dense.
  zsp = zero_shot_fitness_predictions.astype(jnp.float32)
  pred = pooled @ params['w_head'].astype(jnp.float32) + params['b_head']
  pred = pred + zsp * params['zs_w']
  preds = pred.reshape(-1, T)                               # mirrors .view(-1, dim)
  if T == 1:
    preds = preds.squeeze(-1)                               # mirrors .squeeze(dim=-1)
  # TODO(synk): repr_layers / hidden_representations are pass-through bookkeeping
  # in the reference module and are returned empty here.
  return {'target_predictions': {'fitness': preds}, 'representations': {}}


def _reference_forward(tokens, params, zsp, K):
  """Pure-JAX reference using the same folded-table / bf16-operand choices."""
  B, L = tokens.shape
  A, D = params['w_emb'].shape
  T = params['w_head'].shape[1]
  P = (K - 1) // 2
  table = _fold_embedding_table(params['w_emb'], params['ln_g'],
                                params['ln_b']).astype(jnp.bfloat16)
  x = table[tokens].astype(jnp.float32)                     # (B, L, D)
  xp = jnp.pad(x, ((0, 0), (P, P), (0, 0)))
  wconv = params['w_conv'].astype(jnp.bfloat16)             # (K, D, D)
  acc = jnp.zeros((B * L, D), jnp.float32) + params['b_conv'].astype(jnp.float32)
  for k in range(K):
    xk = xp[:, k:k + L, :].reshape(B * L, D).astype(jnp.bfloat16)
    acc = acc + jnp.dot(xk, wconv[k], preferred_element_type=jnp.float32)
  x = jnp.maximum(acc, 0.0).reshape(B, L, D)
  pooled = jnp.mean(x, axis=1)
  pred = pooled @ params['w_head'].astype(jnp.float32) + params['b_head']
  pred = pred + zsp.astype(jnp.float32) * params['zs_w']
  pred = pred.reshape(-1, T)
  return pred.squeeze(-1) if T == 1 else pred


if __name__ == "__main__":
  key = jax.random.PRNGKey(0)
  B, L = 16, 8           # batch, seq_len  (TB=8 auto-picked -> grid=(2,))
  A = 24                 # alphabet size
  D = 32                 # embed_dim (lane-padded to 128 inside the wrapper)
  K = 3                  # conv_kernel_size
  T = 1                  # target_config['fitness']['dim']
  padding_idx = 1

  ks = jax.random.split(key, 8)
  tokens = jax.random.randint(ks[0], (B, L), 0, A)

  # Deterministic synthetic parameters (shapes match the PyTorch module).
  w_emb = 0.02 * jax.random.normal(ks[1], (A, D), jnp.float32)
  w_emb = w_emb.at[padding_idx].set(0.0)            # nn.Embedding(padding_idx=...)
  ln_g = jnp.ones((1, D), jnp.float32)
  ln_b = jnp.zeros((1, D), jnp.float32)
  # PyTorch Conv1d weight (Cout, Cin, K) -> kernel layout (K, Cin, Cout)
  w_conv_torch = 0.05 * jax.random.normal(ks[2], (D, D, K), jnp.float32)
  w_conv = jnp.transpose(w_conv_torch, (2, 1, 0))
  b_conv = 0.01 * jax.random.normal(ks[3], (1, D), jnp.float32)
  # PyTorch Linear weight (dim, in) -> kernel layout (in, dim)
  w_head_torch = 0.05 * jax.random.normal(ks[4], (T, D), jnp.float32)
  w_head = jnp.transpose(w_head_torch)
  b_head = 0.01 * jax.random.normal(ks[5], (1, T), jnp.float32)
  zs_w = jnp.ones((1, T), jnp.float32)              # torch.nn.init.constant_(w, 1.0)

  zero_shot_fitness_predictions = jax.random.normal(ks[6], (B, 1), jnp.float32)

  params = dict(w_emb=w_emb, ln_g=ln_g, ln_b=ln_b, w_conv=w_conv, b_conv=b_conv,
                w_head=w_head, b_head=b_head, zs_w=zs_w)

  result = augmented_property_predictor(tokens, params,
                                        zero_shot_fitness_predictions,
                                        conv_kernel_size=K)
  preds = result['target_predictions']['fitness']
  jax.block_until_ready(preds)

  ref = _reference_forward(tokens, params, zero_shot_fitness_predictions, K)
  np.testing.assert_allclose(np.asarray(preds), np.asarray(ref),
                             rtol=1e-3, atol=1e-3)
  print("KERNEL_OK")
</pallas_src>

<mosaic_0001>
module attributes {stable_mosaic.version = 11 : i64} {
  func.func @_fwd_kernel(%arg0: i32, %arg1: memref<64x1xi32, #tpu.memory_space<vmem>>, %arg2: memref<24x128xbf16, #tpu.memory_space<vmem>>, %arg3: memref<3x128x128xbf16, #tpu.memory_space<vmem>>, %arg4: memref<1x128xf32, #tpu.memory_space<vmem>>, %arg5: memref<8x128xf32, #tpu.memory_space<vmem>>) attributes {dimension_semantics = [#tpu.dimension_semantics<parallel>], iteration_bounds = array<i64: 2>, scalar_prefetch = 0 : i64, scratch_operands = 0 : i64, tpu.core_type = #tpu.core_type<tc>, window_params = [{transform_indices = @transform_0, window_bounds = array<i64: 64, 1>}, {pipeline_mode = #tpu.pipeline_mode<synchronous>, transform_indices = @transform_1, window_bounds = array<i64: 24, 128>}, {pipeline_mode = #tpu.pipeline_mode<synchronous>, transform_indices = @transform_2, window_bounds = array<i64: 3, 128, 128>}, {pipeline_mode = #tpu.pipeline_mode<synchronous>, transform_indices = @transform_3, window_bounds = array<i64: 1, 128>}, {transform_indices = @transform_4, window_bounds = array<i64: 8, 128>}]} {
    %c0 = arith.constant 0 : index
    %c0_0 = arith.constant 0 : index
    %0 = vector.load %arg1[%c0, %c0_0] : memref<64x1xi32, #tpu.memory_space<vmem>>, vector<64x1xi32>
    %1 = tpu.iota {dimensions = array<i32: 1>} : vector<64x24xi32>
    %2 = vector.broadcast %0 : vector<64x1xi32> to vector<64x24xi32>
    %3 = arith.cmpi eq, %1, %2 : vector<64x24xi32>
    %4 = arith.extui %3 : vector<64x24xi1> to vector<64x24xi32>
    %5 = arith.sitofp %4 : vector<64x24xi32> to vector<64x24xf32>
    %6 = arith.truncf %5 : vector<64x24xf32> to vector<64x24xbf16>
    %c0_1 = arith.constant 0 : index
    %c0_2 = arith.constant 0 : index
    %7 = vector.load %arg2[%c0_1, %c0_2] : memref<24x128xbf16, #tpu.memory_space<vmem>>, vector<24x128xbf16>
    %cst = arith.constant dense<0.000000e+00> : vector<64x128xf32>
    %8 = tpu.matmul %6, %7, %cst {dimension_numbers = #tpu.dot_dimension_numbers<[1], [0], [0], [1], [0, 0, 1, 1], [], []>} : vector<64x24xbf16>, vector<24x128xbf16>, vector<64x128xf32> -> vector<64x128xf32>
    %9 = tpu.iota {dimensions = array<i32: 0>} : vector<64x1xi32>
    %c8_i32 = arith.constant 8 : i32
    %c0_i32 = arith.constant 0 : i32
    %10 = arith.cmpi eq, %c8_i32, %c0_i32 : i32
    %c1_i32 = arith.constant 1 : i32
    %11 = arith.select %10, %c1_i32, %c8_i32 : i32
    %12 = vector.broadcast %11 : i32 to vector<64x1xi32>
    %13 = arith.remsi %9, %12 : vector<64x1xi32>
    %c0_i32_3 = arith.constant 0 : i32
    %14 = vector.broadcast %c0_i32_3 : i32 to vector<64x1xi32>
    %15 = arith.cmpi ne, %13, %14 : vector<64x1xi32>
    %c0_i32_4 = arith.constant 0 : i32
    %16 = vector.broadcast %c0_i32_4 : i32 to vector<64x1xi32>
    %17 = arith.cmpi slt, %13, %16 : vector<64x1xi32>
    %c0_i32_5 = arith.constant 0 : i32
    %18 = arith.cmpi slt, %11, %c0_i32_5 : i32
    %19 = vector.broadcast %18 : i1 to vector<64x1xi1>
    %20 = vector.broadcast %19 : vector<64x1xi1> to vector<64x1xi1>
    %21 = arith.xori %17, %20 : vector<64x1xi1>
    %22 = arith.andi %21, %15 : vector<64x1xi1>
    %23 = vector.broadcast %11 : i32 to vector<64x1xi32>
    %24 = arith.addi %13, %23 : vector<64x1xi32>
    %25 = arith.select %22, %24, %13 : vector<64x1xi1>, vector<64x1xi32>
    %c0_6 = arith.constant 0 : index
    %c0_7 = arith.constant 0 : index
    %26 = vector.load %arg4[%c0_6, %c0_7] : memref<1x128xf32, #tpu.memory_space<vmem>>, vector<1x128xf32>
    %c1_i32_8 = arith.constant 1 : i32
    %27 = tpu.dynamic_rotate %8 by %c1_i32_8 dim 0 : vector<64x128xf32>, i32 -> vector<64x128xf32>
    %c1_i32_9 = arith.constant 1 : i32
    %28 = vector.broadcast %c1_i32_9 : i32 to vector<64x1xi32>
    %29 = arith.cmpi sge, %25, %28 : vector<64x1xi32>
    %c9_i32 = arith.constant 9 : i32
    %30 = vector.broadcast %c9_i32 : i32 to vector<64x1xi32>
    %31 = arith.cmpi slt, %25, %30 : vector<64x1xi32>
    %32 = arith.andi %29, %31 : vector<64x1xi1>
    %cst_10 = arith.constant 0.000000e+00 : f32
    %33 = vector.shape_cast %32 : vector<64x1xi1> to vector<64x1xi1>
    %34 = vector.broadcast %33 : vector<64x1xi1> to vector<64x128xi1>
    %35 = vector.broadcast %cst_10 : f32 to vector<64x128xf32>
    %36 = arith.select %34, %27, %35 : vector<64x128xi1>, vector<64x128xf32>
    %37 = arith.truncf %36 : vector<64x128xf32> to vector<64x128xbf16>
    %c0_11 = arith.constant 0 : index
    %c0_12 = arith.constant 0 : index
    %c0_13 = arith.constant 0 : index
    %38 = vector.load %arg3[%c0_11, %c0_12, %c0_13] : memref<3x128x128xbf16, #tpu.memory_space<vmem>>, vector<1x128x128xbf16>
    %39 = vector.shape_cast %38 : vector<1x128x128xbf16> to vector<128x128xbf16>
    %cst_14 = arith.constant dense<0.000000e+00> : vector<64x128xf32>
    %40 = tpu.matmul %37, %39, %cst_14 {dimension_numbers = #tpu.dot_dimension_numbers<[1], [0], [0], [1], [0, 0, 1, 1], [], []>} : vector<64x128xbf16>, vector<128x128xbf16>, vector<64x128xf32> -> vector<64x128xf32>
    %41 = vector.broadcast %26 : vector<1x128xf32> to vector<64x128xf32>
    %42 = arith.addf %41, %40 : vector<64x128xf32>
    %c0_i32_15 = arith.constant 0 : i32
    %43 = vector.broadcast %c0_i32_15 : i32 to vector<64x1xi32>
    %44 = arith.cmpi sge, %25, %43 : vector<64x1xi32>
    %c8_i32_16 = arith.constant 8 : i32
    %45 = vector.broadcast %c8_i32_16 : i32 to vector<64x1xi32>
    %46 = arith.cmpi slt, %25, %45 : vector<64x1xi32>
    %47 = arith.andi %44, %46 : vector<64x1xi1>
    %cst_17 = arith.constant 0.000000e+00 : f32
    %48 = vector.shape_cast %47 : vector<64x1xi1> to vector<64x1xi1>
    %49 = vector.broadcast %48 : vector<64x1xi1> to vector<64x128xi1>
    %50 = vector.broadcast %cst_17 : f32 to vector<64x128xf32>
    %51 = arith.select %49, %8, %50 : vector<64x128xi1>, vector<64x128xf32>
    %52 = arith.truncf %51 : vector<64x128xf32> to vector<64x128xbf16>
    %c1 = arith.constant 1 : index
    %c0_18 = arith.constant 0 : index
    %c0_19 = arith.constant 0 : index
    %53 = vector.load %arg3[%c1, %c0_18, %c0_19] : memref<3x128x128xbf16, #tpu.memory_space<vmem>>, vector<1x128x128xbf16>
    %54 = vector.shape_cast %53 : vector<1x128x128xbf16> to vector<128x128xbf16>
    %cst_20 = arith.constant dense<0.000000e+00> : vector<64x128xf32>
    %55 = tpu.matmul %52, %54, %cst_20 {dimension_numbers = #tpu.dot_dimension_numbers<[1], [0], [0], [1], [0, 0, 1, 1], [], []>} : vector<64x128xbf16>, vector<128x128xbf16>, vector<64x128xf32> -> vector<64x128xf32>
    %56 = arith.addf %42, %55 : vector<64x128xf32>
    %c63_i32 = arith.constant 63 : i32
    %57 = tpu.dynamic_rotate %8 by %c63_i32 dim 0 : vector<64x128xf32>, i32 -> vector<64x128xf32>
    %c-1_i32 = arith.constant -1 : i32
    %58 = vector.broadcast %c-1_i32 : i32 to vector<64x1xi32>
    %59 = arith.cmpi sge, %25, %58 : vector<64x1xi32>
    %c7_i32 = arith.constant 7 : i32
    %60 = vector.broadcast %c7_i32 : i32 to vector<64x1xi32>
    %61 = arith.cmpi slt, %25, %60 : vector<64x1xi32>
    %62 = arith.andi %59, %61 : vector<64x1xi1>
    %cst_21 = arith.constant 0.000000e+00 : f32
    %63 = vector.shape_cast %62 : vector<64x1xi1> to vector<64x1xi1>
    %64 = vector.broadcast %63 : vector<64x1xi1> to vector<64x128xi1>
    %65 = vector.broadcast %cst_21 : f32 to vector<64x128xf32>
    %66 = arith.select %64, %57, %65 : vector<64x128xi1>, vector<64x128xf32>
    %67 = arith.truncf %66 : vector<64x128xf32> to vector<64x128xbf16>
    %c2 = arith.constant 2 : index
    %c0_22 = arith.constant 0 : index
    %c0_23 = arith.constant 0 : index
    %68 = vector.load %arg3[%c2, %c0_22, %c0_23] : memref<3x128x128xbf16, #tpu.memory_space<vmem>>, vector<1x128x128xbf16>
    %69 = vector.shape_cast %68 : vector<1x128x128xbf16> to vector<128x128xbf16>
    %cst_24 = arith.constant dense<0.000000e+00> : vector<64x128xf32>
    %70 = tpu.matmul %67, %69, %cst_24 {dimension_numbers = #tpu.dot_dimension_numbers<[1], [0], [0], [1], [0, 0, 1, 1], [], []>} : vector<64x128xbf16>, vector<128x128xbf16>, vector<64x128xf32> -> vector<64x128xf32>
    %71 = arith.addf %56, %70 : vector<64x128xf32>
    %cst_25 = arith.constant 0.000000e+00 : f32
    %72 = vector.broadcast %cst_25 : f32 to vector<64x128xf32>
    %73 = arith.maximumf %71, %72 : vector<64x128xf32>
    %74 = vector.shape_cast %73 : vector<64x128xf32> to vector<8x8x128xf32>
    %cst_26 = arith.constant dense<0.000000e+00> : vector<8x128xf32>
    %75 = vector.multi_reduction <add>, %74, %cst_26 [1] : vector<8x8x128xf32> to vector<8x128xf32>
    %cst_27 = arith.constant 8.000000e+00 : f32
    %76 = vector.broadcast %cst_27 : f32 to vector<8x128xf32>
    %77 = arith.divf %75, %76 : vector<8x128xf32>
    %c0_28 = arith.constant 0 : index
    %c0_29 = arith.constant 0 : index
    %78 = vector.load %arg5[%c0_28, %c0_29] : memref<8x128xf32, #tpu.memory_space<vmem>>, vector<8x128xf32>
    tpu.vector_store %arg5[%c0_28, %c0_29], %77 {strides = array<i32>} : memref<8x128xf32, #tpu.memory_space<vmem>>, vector<8x128xf32>,
    return
  }
  func.func @transform_0(%arg0: i32) -> (i32, i32) {
    %c0_i32 = arith.constant 0 : i32
    %c0_i32_0 = arith.constant 0 : i32
    return %arg0, %c0_i32 : i32, i32
  }
  func.func @transform_1(%arg0: i32) -> (i32, i32) {
    %c0_i32 = arith.constant 0 : i32
    %c0_i32_0 = arith.constant 0 : i32
    %c0_i32_1 = arith.constant 0 : i32
    return %c0_i32, %c0_i32_0 : i32, i32
  }
  func.func @transform_2(%arg0: i32) -> (i32, i32, i32) {
    %c0_i32 = arith.constant 0 : i32
    %c0_i32_0 = arith.constant 0 : i32
    %c0_i32_1 = arith.constant 0 : i32
    %c0_i32_2 = arith.constant 0 : i32
    return %c0_i32, %c0_i32_0, %c0_i32_1 : i32, i32, i32
  }
  func.func @transform_3(%arg0: i32) -> (i32, i32) {
    %c0_i32 = arith.constant 0 : i32
    %c0_i32_0 = arith.constant 0 : i32
    %c0_i32_1 = arith.constant 0 : i32
    return %c0_i32, %c0_i32_0 : i32, i32
  }
  func.func @transform_4(%arg0: i32) -> (i32, i32) {
    %c0_i32 = arith.constant 0 : i32
    %c0_i32_0 = arith.constant 0 : i32
    return %arg0, %c0_i32 : i32, i32
  }
}

</mosaic_0001>

<bundles_post_ra>
// kernel: tpu_custom_call.1
= control target key start
LH: loop header
LB: loop body
LE: loop exit
PB: predicated region body
PF: predicated region fallthrough
CT: control target
= control target key end

     0   :  { %9 = vsyncpa [#allocation3], 0  ;;  %s1709_s0 = inlined_call_operand.vmem [shape: s32[128,1], index: 0, kind: input, shape index: {}]   ;;  %s1710_s1 = inlined_call_operand.vmem [shape: bf16[24,128], index: 1, kind: input, shape index: {}]   ;;  %s1711_s2 = inlined_call_operand.hbm [shape: bf16[3,128,128], index: 2, kind: input, shape index: {}]   ;;  %s1712_s3 = inlined_call_operand.vmem [shape: f32[1,128], index: 3, kind: input, shape index: {}]   ;;  %s1713_s4 = inlined_call_operand.hbm [shape: f32[16,128], index: 4, kind: output, shape index: {}]  }
   0x1   :  { %10 = vsyncpa [#allocation4], 0 }
   0x2   :  { %12 = vsyncpa [#allocation4 + $0x1], 0  ;;  %s1486_s15 = smov 0   ;;  %s1488_s16 = smov 0  }
   0x3   :  { %s1490_s17 = smov 0   ;;  %s1492_s18 = smov 0  }
   0x4 LB: > { %s1507_s19 = sadd.s32 4294967295, %s1453_s18   ;;  %s1122_s20 = sadd.s32 4294967294, %s1453_s18   ;;  %s1453_s18 = sphi %s1492_s18, %s1721_s18   ;;  %s1449_s17 = sphi %s1490_s17, %s1720_s17   ;;  %s1445_s16 = sphi %s1488_s16, %s1719_s16   ;;  %s1441_s15 = sphi %s1486_s15, %s1718_s15  }
   0x5   : > { %s1511_s21 = sadd.s32 1, %s1453_s18   ;;  %s114_s22 = sadd.s32 1, %s1449_s17 }
   0x6   : > { %s111_s23 = ssub.s32 %s1453_s18, %s1511_s21  ;;  %p124_p0 = scmp.ne.s32.totalorder %s1449_s17, %s1445_s16 }
   0x7   : > { %p112_p1 = scmp.eq.s32.totalorder %s111_s23, 0  ;;  %p125_p2 = scmp.eq.s32.totalorder %s1507_s19, 1 }
   0x8   : > { %p130_p3 = scmp.ne.s32.totalorder %s1445_s16, %s1441_s15  ;;  %p131_p4 = scmp.eq.s32.totalorder %s1122_s20, 1 }
   0x9   : > { %s1522_s24 = scalar_select %p112_p1, %s1449_s17, %s114_s22  }
   0xa   : > { %p1524_p5 = por %p125_p2, %p124_p0  ;;  %p1528_p6 = por %p131_p4, %p130_p3 }
   0xb   : > { %p1123_p7 = scmp.ge.s32.totalorder %s1453_s18, 1  ;;  %p138_p8 = scmp.lt.s32.totalorder %s1453_s18, 3 }
   0xc   : > { %p1310_p9 = scmp.eq.s32.totalorder %s1507_s19, 0  ;;  %s152_s29 = sshll.u32 %s1711_s2, 4  ;;  %s153_s29 = int_to_ptr.hbm [resolvable:$true] %s152_s29 }
   0xd   : > { %p139_p10 = pnand %p1123_p7, %p138_p8  ;;  %s1455_s30 = smov [#allocation2]  }
   0xe   : > { %s154_s5 = sshll.u32 %s1455_s30, 4  ;;  %s1456_s6 = smov 64   ;;  %s155_s5 = int_to_ptr.vmem [resolvable:$true] %s154_s5 }
   0xf   : > { %p1302_p11 = pneg %p139_p10  ;;  %s1457_s7 = smov 4  }
  0x10   : > { %182 = sbr.rel (%p139_p10) target bundleno = 552 (0x228), region = 36 }
  0x11   : > { %p1303_p12 = pnand %p1310_p9, %p1302_p11 }
  0x13   : > { %1305 = dma.hbm_to_vmem [thread:$0]  (!%p1303_p12), %s153_s29, 3072, %s155_s5, [#allocation3], %s1456_s6, %s1456_s6, %s1457_s7  }
  0x15   : > { %1432 = dma.done.wait (%p1310_p9), [#allocation3], 3072  }
  0x16   : > { %1434 = vsyncadd (%p1310_p9), [#allocation3], 4294964224  ;;  %s1545_s8 = sshll.u32 %s1507_s19, 3  ;;  %v1458_v0 = vmov 0   ;;  %v280_v9 = vld [vmem:[%s1710_s1 + $0x8] sm:$0xf]  ;;  %v224_v14 = vlaneseq }
  0x17   : > { %1352 = vset.pattern.permute.xlu1 %v1458_v0  ;;  %1351 = vset.pattern.permute.xlu0 %v1458_v0  ;;  %p210_p13 = scmp.lt.s32.totalorder %s1545_s8, 15  ;;  %v286_v10 = vunpack.c.l.b16 %v280_v9  ;;  %vm303_vm0 = vcmask 1043456   ;;  %v1271_v13 = vld [vmem:[%s1710_s1] sm:$0xff]  ;;  %v1459_v19 = vmov 0.0   ;;  %vm290_vm3 = vcmask 195584   ;;  %v1287_v28 = vld [vmem:[#allocation2 + $0x78] sm:$0xff]  ;;  %s1046_s6 = scalar_lea.hbm %s1713_s4, %s1545_s8 }
  0x18   : > { %1353 = vset.pattern.permute.xlu2 %v1458_v0  ;;  %v225_v16 = vand.u32 127, %v224_v14  ;;  %v1295_v29 = vld [vmem:[#allocation2 + $0xb8] sm:$0xff]  ;;  %732 = vmatpush.bf16.msra.mxu2 %v1287_v28  ;;  %v1286_v30 = vld [vmem:[#allocation2 + $0x70] sm:$0xff]  ;;  %v1285_v33 = vld [vmem:[#allocation2 + $0x68] sm:$0xff]  ;;  %v1566_v57 = vshrl.u32 %v224_v14, 7  ;;  %s206_s28 = sand.u32 1, %s1445_s16  }
  0x19   : > { %s211_s9 = scalar_select %p210_p13, %s1545_s8, 15  ;;  %v288_v11 = vpack.c.b16 %v286_v10, %v286_v10  ;;  %903 = vmatpush.bf16.msra.mxu3 %v1295_v29  ;;  %v1294_v31 = vld [vmem:[#allocation2 + $0xb0] sm:$0xff]  ;;  %v1293_v34 = vld [vmem:[#allocation2 + $0xa8] sm:$0xff]  ;;  %v1284_v35 = vld [vmem:[#allocation2 + $0x60] sm:$0xff] }
  0x1a   : > { %v1283_v39 = vld [vmem:[#allocation2 + $0x58] sm:$0xff]  ;;  %v1282_v45 = vld [vmem:[#allocation2 + $0x50] sm:$0xff]  ;;  %v1292_v46 = vld [vmem:[#allocation2 + $0xa0] sm:$0xff]  ;;  %v1571_v59 = vadd.s32 8, %v1566_v57  ;;  %v349_v63 = vand.u32 7, %v1566_v57  ;;  %vm777_vm10 = vcmp.lt.s32.totalorder %v1566_v57, 7 }
  0x1b   : > { %s1130_s10 = sshll.u32 %s211_s9, 3  ;;  %v305_v12 = vsel %vm303_vm0, %v288_v11, 0  ;;  %v1281_v47 = vld [vmem:[#allocation2 + $0x48] sm:$0xff]  ;;  %v1291_v48 = vld [vmem:[#allocation2 + $0x98] sm:$0xff]  ;;  %v1280_v49 = vld [vmem:[#allocation2 + $0x40] sm:$0xff]  ;;  %v1592_v11 = vadd.s32 16, %v1566_v57 }
  0x1c   : > { %s213_s13 = scalar_lea.vmem %s1709_s0, %s1130_s10  ;;  %313 = vmatpush.bf16.msra.mxu0 %v305_v12  ;;  %733 = vmatpush.bf16.msra.mxu2 %v1286_v30  ;;  %v1290_v50 = vld [vmem:[#allocation2 + $0x90] sm:$0xff]  ;;  %v1289_v51 = vld [vmem:[#allocation2 + $0x88] sm:$0xff]  ;;  %v1288_v52 = vld [vmem:[#allocation2 + $0x80] sm:$0xff]  ;;  %v356_v0 = vand.u32 7, %v1571_v59  ;;  %vm794_vm11 = vcmp.lt.s32.totalorder %v349_v63, 7  ;;  %v1595_v12 = vadd.s32 24, %v1566_v57 }
  0x1d   : > { %v218_v1 = vld [vmem:[%s213_s13 + $0x10] sm:$0xff]  ;;  %v216_v2 = vld [vmem:[%s213_s13] sm:$0xff]  ;;  %v219_v4 = vld [vmem:[%s213_s13 + $0x18] sm:$0xff]  ;;  %904 = vmatpush.bf16.msra.mxu3 %v1294_v31  ;;  %s1673_s29 = sshll.u32 %s206_s28, 3  ;;  %s1050_s10 = sshll.u32 %s1046_s6, 4  ;;  %s1051_s10 = int_to_ptr.hbm [resolvable:$true] %s1050_s10 }
  0x1e   : > { %233 = vperm.xlu1 %1352, %v218_v1   ;;  %227 = vperm.xlu0 %1351, %v216_v2   ;;  %v220_v3 = vld [vmem:[%s213_s13 + $0x20] sm:$0xff]  ;;  %v217_v5 = vld [vmem:[%s213_s13 + $0x8] sm:$0xff]  ;;  %v223_v7 = vld [vmem:[%s213_s13 + $0x38] sm:$0xff]  ;;  %vm795_vm12 = vcmp.lt.s32.totalorder %v356_v0, 7  ;;  %s208_s7 = scalar_lea.vmem [#allocation5], %s1673_s29  ;;  %s1036_s8 = scalar_lea.sflag [#allocation4], %s206_s28 }
  0x1f   : > { %239 = vperm.xlu2 %1353, %v220_v3   ;;  %v221_v6 = vld [vmem:[%s213_s13 + $0x28] sm:$0xff]  ;;  %v222_v8 = vld [vmem:[%s213_s13 + $0x30] sm:$0xff]  ;;  %v1279_v53 = vld [vmem:[#allocation2 + $0x38] sm:$0xff]  ;;  %s1048_s9 = sshll.u32 %s208_s7, 4  ;;  %s1401_s11 = sshra.s32 %s1051_s10, 4  ;;  %s1049_s9 = int_to_ptr.vmem [resolvable:$true] %s1048_s9  ;;  %s1402_s11 = int_to_ptr.hbm [resolvable:$true] %s1401_s11 }
  0x20   : > { %314 = vmatpush.bf16.msra.mxu0 %v1271_v13  ;;  %734 = vmatpush.bf16.msra.mxu2 %v1285_v33  ;;  %v1278_v55 = vld [vmem:[#allocation2 + $0x30] sm:$0xff]  ;;  %v1277_v56 = vld [vmem:[#allocation2 + $0x28] sm:$0xff]  ;;  %v1276_v61 = vld [vmem:[#allocation2 + $0x20] sm:$0xff]  ;;  %s1403_s12 = scalar_lea.hbm %s1402_s11, 8  ;;  %s1407_s19 = scalar_lea.hbm %s1713_s4, 16 }
  0x21   : > { %905 = vmatpush.bf16.msra.mxu3 %v1293_v34  ;;  %575 = vmatpush.bf16.msra.mxu1 %v1279_v53  ;;  %v1275_v62 = vld [vmem:[#allocation2 + $0x18] sm:$0xff]  ;;  %vm1255_vm13 = vmpackc.low %vm795_vm12, %vm794_vm11  ;;  %v1273_v9 = vld [vmem:[#allocation2 + $0x8] sm:$0xff]  ;;  %p1404_p0 = scmp.ne.s32.totalorder %s1402_s11, %s1403_s12  ;;  %p1408_p3 = scmp.lt.s32.totalorder %s1402_s11, %s1713_s4 }
  0x22   : > { %v1272_v14 = vld [vmem:[#allocation2] sm:$0xff]  ;;  %p1409_p4 = scmp.lt.s32.totalorder %s1407_s19, %s1403_s12 }
  0x23   : > { %p1405_p1 = pnand %p1404_p0, %p1524_p5 }
  0x24   : > { %735 = vmatpush.bf16.msra.mxu2 %v1284_v35  ;;  %p1410_p7 = por %p1409_p4, %p1408_p3 }
  0x25   : > { %906 = vmatpush.bf16.msra.mxu3 %v1292_v46  ;;  %576 = vmatpush.bf16.msra.mxu1 %v1278_v55  ;;  %p1406_p2 = pneg %p1405_p1 }
  0x26   : > { %236 = vperm.xlu1 %1352, %v219_v4   ;;  %230 = vperm.xlu0 %1351, %v217_v5   ;;  %v1274_v5 = vld [vmem:[#allocation2 + $0x10] sm:$0xff] }
  0x27   : > { %242 = vperm.xlu2 %1353, %v221_v6   ;;  %p1411_p8 = pnand %p1410_p7, %p1406_p2 }
  0x28   : > { %736 = vmatpush.bf16.msra.mxu2 %v1283_v39  ;;  %v344_v39 = vadd.s32 56, %v1566_v57 }
  0x29   : > { %907 = vmatpush.bf16.msra.mxu3 %v1291_v48  ;;  %577 = vmatpush.bf16.msra.mxu1 %v1277_v56 }
  0x2c   : > { %737 = vmatpush.bf16.msra.mxu2 %v1282_v45 }
  0x2d   : > { %908 = vmatpush.bf16.msra.mxu3 %v1290_v50  ;;  %578 = vmatpush.bf16.msra.mxu1 %v1276_v61 }
  0x2e   : > { %248 = vperm.xlu1 %1352, %v223_v7   ;;  %245 = vperm.xlu0 %1351, %v222_v8  }
  0x30   : > { %738 = vmatpush.bf16.msra.mxu2 %v1281_v47  ;;  %v398_v47 = vand.u32 7, %v344_v39 }
  0x31   : > { %909 = vmatpush.bf16.msra.mxu3 %v1289_v51  ;;  %579 = vmatpush.bf16.msra.mxu1 %v1275_v62 }
  0x34   : > { %739 = vmatpush.bf16.msra.mxu2 %v1280_v49 }
  0x35   : > { %910 = vmatpush.bf16.msra.mxu3 %v1288_v52  ;;  %580 = vmatpush.bf16.msra.mxu1 %v1274_v5 }
  0x39   : > { %581 = vmatpush.bf16.msra.mxu1 %v1273_v9 }
  0x3d   : > { %582 = vmatpush.bf16.msra.mxu1 %v1272_v14 }
  0x79   : > { %v240_v26 = vpop.permute.xlu2 %239 }
  0x7a   : > { %vm254_vm6 = vcmp.eq.s32.totalorder %v225_v16, %v240_v26 }
  0x7b   : > { %v1135_v36 = vsel %vm254_vm6, 1.0, %v1459_v19  ;;  %vm460_vm6 = vcmp.ge.s32.totalorder %v356_v0, 1 }
  0x81   : > { %v243_v32 = vpop.permute.xlu2 %242 }
  0x82   : > { %vm255_vm7 = vcmp.eq.s32.totalorder %v225_v16, %v243_v32 }
  0x83   : > { %v1136_v37 = vsel %vm255_vm7, 1.0, %v1459_v19 }
  0x84   : > { %v276_v38 = vpack.c.bf16 %v1136_v37, %v1135_v36 }
  0x90   : > { %v228_v15 = vpop.permute.xlu0 %227  ;;  %v234_v18 = vpop.permute.xlu1 %233 }
  0x91   : > { %vm250_vm1 = vcmp.eq.s32.totalorder %v225_v16, %v228_v15  ;;  %vm252_vm4 = vcmp.eq.s32.totalorder %v225_v16, %v234_v18  ;;  %v363_v15 = vand.u32 7, %v1592_v11 }
  0x92   : > { %v1131_v20 = vsel %vm250_vm1, 1.0, %v1459_v19  ;;  %v1133_v24 = vsel %vm252_vm4, 1.0, %v1459_v19  ;;  %vm450_vm4 = vcmp.lt.s32.totalorder %v1566_v57, 1 }
  0x93   : > { %vm796_vm14 = vcmp.lt.s32.totalorder %v363_v15, 7  ;;  %vm461_vm12 = vcmp.ge.s32.totalorder %v363_v15, 1 }
  0x98   : > { %v231_v17 = vpop.permute.xlu0 %230  ;;  %v237_v23 = vpop.permute.xlu1 %236 }
  0x99   : > { %vm251_vm2 = vcmp.eq.s32.totalorder %v225_v16, %v231_v17  ;;  %vm253_vm5 = vcmp.eq.s32.totalorder %v225_v16, %v237_v23 }
  0x9a   : > { %v1132_v21 = vsel %vm251_vm2, 1.0, %v1459_v19  ;;  %v1134_v25 = vsel %vm253_vm5, 1.0, %v1459_v19  ;;  %vm1622_vm5 = vcmp.ge.s32.totalorder %v349_v63, 1 }
  0x9b   : > { %v274_v22 = vpack.c.bf16 %v1132_v21, %v1131_v20  ;;  %v275_v27 = vpack.c.bf16 %v1134_v25, %v1133_v24  ;;  %v341_v24 = vadd.s32 32, %v1566_v57  ;;  %v342_v25 = vadd.s32 40, %v1566_v57  ;;  %vm1179_vm7 = vmpackc.low %vm460_vm6, %vm1622_vm5 }
  0x9c   : > { %vm1019_vm5 = vcmask 1041409   ;;  %vm1021_vm6 = vcmask 1042434  }
  0x9d   : > { %1143 = vmatmul.msk.bf16.vlgmr.msra.gmra.mxu0 %vm290_vm3, %v274_v22  ;;  %v384_v28 = vand.u32 7, %v342_v25 }
  0x9f   : > { %vm799_vm2 = vcmp.lt.s32.totalorder %v384_v28, 7 }
  0xa0   : > { %v249_v40 = vpop.permute.xlu1 %248  ;;  %v246_v41 = vpop.permute.xlu0 %245 }
  0xa1   : > { %vm257_vm8 = vcmp.eq.s32.totalorder %v225_v16, %v249_v40  ;;  %vm256_vm9 = vcmp.eq.s32.totalorder %v225_v16, %v246_v41  ;;  %v370_v16 = vand.u32 7, %v1595_v12 }
  0xa2   : > { %v1138_v42 = vsel %vm257_vm8, 1.0, %v1459_v19  ;;  %v1137_v43 = vsel %vm256_vm9, 1.0, %v1459_v19  ;;  %vm801_vm9 = vcmp.lt.s32.totalorder %v398_v47, 7 }
  0xa3   : > { %v277_v44 = vpack.c.bf16 %v1138_v42, %v1137_v43  ;;  %vm797_vm15 = vcmp.lt.s32.totalorder %v370_v16, 7 }
  0xa4   : > { %vm1258_vm0 = vmpackc.low %vm797_vm15, %vm796_vm14  ;;  %vm464_vm15 = vcmp.ge.s32.totalorder %v384_v28, 1 }
  0xad   : > { %1144 = vmatmul.msk.bf16.gmra.mxu0 %vm290_vm3, %v275_v27  ;;  %v377_v27 = vand.u32 7, %v341_v24 }
  0xaf   : > { %vm798_vm1 = vcmp.lt.s32.totalorder %v377_v27, 7 }
  0xbd   : > { %1145 = vmatmul.msk.bf16.gmra.mxu0 %vm290_vm3, %v276_v38  ;;  %v343_v38 = vadd.s32 48, %v1566_v57  ;;  %v1660_v57 = vld [vmem:[%s1712_s3] ss:$0 sm:$0xff] }
  0xbf   : > { %v391_v46 = vand.u32 7, %v343_v38 }
  0xc1   : > { %vm800_vm8 = vcmp.lt.s32.totalorder %v391_v46, 7 }
  0xc2   : > { %vm1264_vm11 = vmpackc.low %vm801_vm9, %vm800_vm8  ;;  %vm1025_vm8 = vcmask 1044484   ;;  %vm1027_vm9 = vcmask 1045509  }
  0xcd   : > { %1146 = vmatmul.msk.bf16.gmra.mxu0 %vm290_vm3, %v277_v44  ;;  %vm1261_vm3 = vmpackc.low %vm799_vm2, %vm798_vm1  ;;  %vm465_vm1 = vcmp.ge.s32.totalorder %v391_v46, 1  ;;  %vm466_vm2 = vcmp.ge.s32.totalorder %v398_v47, 1 }
 0x11a   : > { %v1563_v54 = vpop.f32.mrf.mxu0 }
 0x11b   : > { %v769_v3 = vrot.slane %v1563_v54, 1  ;;  %v442_v40 = vrot.slane %v1563_v54, 7 }
 0x122   : > { %v1568_v58 = vpop.f32.mrf.mxu0 }
 0x123   : > { %v663_v60 = vpack.c.bf16 %v1568_v58, %v1563_v54  ;;  %v770_v1 = vrot.slane %v1568_v58, 1  ;;  %v443_v35 = vrot.slane %v1568_v58, 7 }
 0x125   : > { %740 = vmatmul.bf16.vlgmr.msra.gmra.mxu2 %v663_v60  ;;  %v784_v7 = vsel %vm777_vm10, %v769_v3, %v770_v1  ;;  %v457_v43 = vsel %vm450_vm4, %v442_v40, %v443_v35 }
 0x12a   : > { %v1578_v2 = vpop.f32.mrf.mxu0 }
 0x12b   : > { %v771_v4 = vrot.slane %v1578_v2, 1  ;;  %v444_v53 = vrot.slane %v1578_v2, 7 }
 0x12d   : > { %v783_v6 = vsel %vm777_vm10, %v770_v1, %v771_v4  ;;  %v456_v56 = vsel %vm450_vm4, %v443_v35, %v444_v53 }
 0x12e   : > { %v1256_v8 = vpack.c.bf16 %v783_v6, %v784_v7 }
 0x130   : > { %1257 = vmatmul.msk.bf16.vlgmr.msra.gmra.mxu3 %vm1255_vm13, %v1256_v8  ;;  %vm462_vm13 = vcmp.ge.s32.totalorder %v370_v16, 1 }
 0x131   : > { %vm1182_vm14 = vmpackc.low %vm462_vm13, %vm461_vm12  ;;  %vm1031_vm12 = vcmask 1047559  }
 0x132   : > { %v1589_v10 = vpop.f32.mrf.mxu0 }
 0x133   : > { %v664_v13 = vpack.c.bf16 %v1589_v10, %v1578_v2  ;;  %v772_v17 = vrot.slane %v1589_v10, 1  ;;  %v445_v52 = vrot.slane %v1589_v10, 7 }
 0x135   : > { %745 = vmatmul.bf16.gmra.mxu2 %v664_v13  ;;  %v782_v21 = vsel %vm777_vm10, %v771_v4, %v772_v17  ;;  %v455_v55 = vsel %vm450_vm4, %v444_v53, %v445_v52 }
 0x136   : > { %v1183_v54 = vpack.c.bf16 %v455_v55, %v456_v56 }
 0x13a   : > { %v1602_v18 = vpop.f32.mrf.mxu0 }
 0x13b   : > { %v773_v19 = vrot.slane %v1602_v18, 1  ;;  %v446_v59 = vrot.slane %v1602_v18, 7 }
 0x13d   : > { %v781_v20 = vsel %vm777_vm10, %v772_v17, %v773_v19  ;;  %v454_v61 = vsel %vm450_vm4, %v445_v52, %v446_v59 }
 0x13e   : > { %v1259_v22 = vpack.c.bf16 %v781_v20, %v782_v21 }
 0x140   : > { %1260 = vmatmul.msk.bf16.gmra.mxu3 %vm1258_vm0, %v1259_v22 }
 0x142   : > { %v1609_v23 = vpop.f32.mrf.mxu0 }
 0x143   : > { %v665_v26 = vpack.c.bf16 %v1609_v23, %v1602_v18  ;;  %v774_v29 = vrot.slane %v1609_v23, 1  ;;  %v447_v58 = vrot.slane %v1609_v23, 7 }
 0x145   : > { %750 = vmatmul.bf16.gmra.mxu2 %v665_v26  ;;  %v780_v33 = vsel %vm777_vm10, %v773_v19, %v774_v29  ;;  %v453_v60 = vsel %vm450_vm4, %v446_v59, %v447_v58 }
 0x146   : > { %v1186_v62 = vpack.c.bf16 %v453_v60, %v454_v61 }
 0x14a   : > { %v331_v30 = vpop.f32.mrf.mxu0 }
 0x14b   : > { %v775_v31 = vrot.slane %v331_v30, 1  ;;  %v448_v63 = vrot.slane %v331_v30, 7 }
 0x14d   : > { %v779_v32 = vsel %vm777_vm10, %v774_v29, %v775_v31  ;;  %v452_v1 = vsel %vm450_vm4, %v447_v58, %v448_v63 }
 0x14e   : > { %v1262_v34 = vpack.c.bf16 %v779_v32, %v780_v33 }
 0x150   : > { %1263 = vmatmul.msk.bf16.gmra.mxu3 %vm1261_vm3, %v1262_v34  ;;  %vm1188_vm3 = vmpackc.low %vm466_vm2, %vm465_vm1 }
 0x152   : > { %v333_v36 = vpop.f32.mrf.mxu0 }
 0x153   : > { %v449_v41 = vrot.slane %v333_v36, 7  ;;  %v666_v42 = vpack.c.bf16 %v333_v36, %v331_v30  ;;  %v776_v48 = vrot.slane %v333_v36, 1 }
 0x155   : > { %755 = vmatmul.bf16.gmra.mxu2 %v666_v42  ;;  %v458_v44 = vsel %vm450_vm4, %v449_v41, %v442_v40  ;;  %v778_v49 = vsel %vm777_vm10, %v775_v31, %v776_v48  ;;  %v785_v50 = vsel %vm777_vm10, %v776_v48, %v769_v3  ;;  %vm463_vm10 = vcmp.ge.s32.totalorder %v377_v27, 1 }
 0x156   : > { %v1180_v45 = vpack.c.bf16 %v457_v43, %v458_v44  ;;  %v1265_v51 = vpack.c.bf16 %v785_v50, %v778_v49  ;;  %vm1185_vm0 = vmpackc.low %vm464_vm15, %vm463_vm10  ;;  %v451_v0 = vsel %vm450_vm4, %v448_v63, %v449_v41  ;;  %v1460_v40 = vmov 8.0  }
 0x157   : > { %v1189_v2 = vpack.c.bf16 %v451_v0, %v452_v1  ;;  %1355 = vrcp.f32 %v1460_v40 }
 0x158   : > { %1181 = vmatmul.msk.bf16.vlgmr.msra.gmra.mxu1 %vm1179_vm7, %v1180_v45  ;;  %vm1023_vm7 = vcmask 1043459  }
 0x15d   : > { %v1356_v53 = vpop.eup %1355 }
 0x15e   : > { %v997_v63 = vmul.f32 8.0, %v1356_v53  ;;  %vm1001_vm4 = vweird.f32 %v1356_v53 }
 0x160   : > { %1266 = vmatmul.msk.bf16.gmra.mxu3 %vm1264_vm11, %v1265_v51  ;;  %vm1029_vm11 = vcmask 1046534  }
 0x168   : > { %1184 = vmatmul.msk.bf16.gmra.mxu1 %vm1182_vm14, %v1183_v54 }
 0x178   : > { %1187 = vmatmul.msk.bf16.gmra.mxu1 %vm1185_vm0, %v1186_v62 }
 0x188   : > { %1190 = vmatmul.msk.bf16.gmra.mxu1 %vm1188_vm3, %v1189_v2 }
 0x1a8   : > { %v741_v3 = vpop.f32.mrf.mxu2 }
 0x1b0   : > { %v743_v5 = vpop.f32.mrf.mxu2 }
 0x1b3   : > { %v912_v4 = vpop.f32.mrf.mxu3 }
 0x1b8   : > { %v746_v8 = vpop.f32.mrf.mxu2 }
 0x1bb   : > { %v914_v6 = vpop.f32.mrf.mxu3 }
 0x1c0   : > { %v748_v12 = vpop.f32.mrf.mxu2 }
 0x1c3   : > { %v917_v10 = vpop.f32.mrf.mxu3 }
 0x1c8   : > { %v751_v15 = vpop.f32.mrf.mxu2 }
 0x1cb   : > { %v919_v13 = vpop.f32.mrf.mxu3 }
 0x1d0   : > { %v753_v29 = vpop.f32.mrf.mxu2 }
 0x1d3   : > { %v922_v17 = vpop.f32.mrf.mxu3 }
 0x1d5   : > { %v584_v7 = vpop.f32.mrf.mxu1 }
 0x1d6   : > { %v607_v19 = vadd.f32 %v1660_v57, %v584_v7 }
 0x1d8   : > { %v761_v25 = vadd.f32 %v741_v3, %v607_v19  ;;  %v756_v50 = vpop.f32.mrf.mxu2 }
 0x1da   : > { %v932_v31 = vadd.f32 %v912_v4, %v761_v25 }
 0x1db   : > { %v924_v33 = vpop.f32.mrf.mxu3 }
 0x1dc   : > { %v940_v39 = vmax.f32 %v932_v31, 0.0 }
 0x1dd   : > { %v586_v9 = vpop.f32.mrf.mxu1 }
 0x1de   : > { %v608_v16 = vadd.f32 %v1660_v57, %v586_v9  ;;  %v948_v47 = vrot.slane %v940_v39, 4 }
 0x1e0   : > { %v762_v22 = vadd.f32 %v743_v5, %v608_v16  ;;  %v949_v60 = vadd.f32 %v948_v47, %v940_v39 }
 0x1e2   : > { %v933_v28 = vadd.f32 %v914_v6, %v762_v22  ;;  %v950_v5 = vrot.slane %v949_v60, 2 }
 0x1e3   : > { %v927_v58 = vpop.f32.mrf.mxu3 }
 0x1e4   : > { %v941_v36 = vmax.f32 %v933_v28, 0.0 }
 0x1e5   : > { %v589_v11 = vpop.f32.mrf.mxu1 }
 0x1e6   : > { %v609_v18 = vadd.f32 %v1660_v57, %v589_v11  ;;  %v954_v44 = vrot.slane %v941_v36, 4 }
 0x1e8   : > { %v763_v24 = vadd.f32 %v746_v8, %v609_v18  ;;  %v955_v55 = vadd.f32 %v954_v44, %v941_v36  ;;  %v998_v8 = vsub.f32 1.0, %v997_v63 }
 0x1ea   : > { %v934_v30 = vadd.f32 %v917_v10, %v763_v24  ;;  %v956_v1 = vrot.slane %v955_v55, 2 }
 0x1eb   : > { %v929_v22 = vpop.f32.mrf.mxu3 }
 0x1ec   : > { %v942_v38 = vmax.f32 %v934_v30, 0.0  ;;  %v957_v11 = vadd.f32 %v956_v1, %v955_v55 }
 0x1ed   : > { %v591_v14 = vpop.f32.mrf.mxu1 }
 0x1ee   : > { %v610_v20 = vadd.f32 %v1660_v57, %v591_v14  ;;  %v960_v46 = vrot.slane %v942_v38, 4  ;;  %v958_v24 = vrot.slane %v957_v11, 1 }
 0x1f0   : > { %v764_v26 = vadd.f32 %v748_v12, %v610_v20  ;;  %v961_v59 = vadd.f32 %v960_v46, %v942_v38 }
 0x1f2   : > { %v935_v32 = vadd.f32 %v919_v13, %v764_v26  ;;  %v962_v4 = vrot.slane %v961_v59, 2 }
 0x1f4   : > { %v943_v41 = vmax.f32 %v935_v32, 0.0  ;;  %v963_v16 = vadd.f32 %v962_v4, %v961_v59 }
 0x1f5   : > { %v594_v21 = vpop.f32.mrf.mxu1 }
 0x1f6   : > { %v611_v23 = vadd.f32 %v1660_v57, %v594_v21  ;;  %v966_v48 = vrot.slane %v943_v41, 4  ;;  %v999_v21 = vmul.f32 %v1356_v53, %v998_v8  ;;  %v964_v28 = vrot.slane %v963_v16, 1 }
 0x1f8   : > { %v765_v27 = vadd.f32 %v751_v15, %v611_v23  ;;  %v967_v61 = vadd.f32 %v966_v48, %v943_v41  ;;  %v758_v15 = vpop.f32.mrf.mxu2 }
 0x1fa   : > { %v936_v34 = vadd.f32 %v922_v17, %v765_v27  ;;  %v968_v6 = vrot.slane %v967_v61, 2  ;;  %v951_v17 = vadd.f32 %v950_v5, %v949_v60 }
 0x1fc   : > { %v944_v43 = vmax.f32 %v936_v34, 0.0  ;;  %v969_v18 = vadd.f32 %v968_v6, %v967_v61  ;;  %v959_v34 = vadd.f32 %v958_v24, %v957_v11 }
 0x1fd   : > { %v596_v35 = vpop.f32.mrf.mxu1 }
 0x1fe   : > { %v612_v37 = vadd.f32 %v1660_v57, %v596_v35  ;;  %v972_v51 = vrot.slane %v944_v43, 4  ;;  %v970_v30 = vrot.slane %v969_v18, 1 }
 0x200   : > { %v766_v42 = vadd.f32 %v753_v29, %v612_v37  ;;  %v973_v0 = vadd.f32 %v972_v51, %v944_v43  ;;  %v952_v29 = vrot.slane %v951_v17, 1  ;;  %v965_v37 = vadd.f32 %v964_v28, %v963_v16 }
 0x201   : > { %v971_v40 = vadd.f32 %v970_v30, %v969_v18 }
 0x202   : > { %v937_v45 = vadd.f32 %v924_v33, %v766_v42  ;;  %v974_v9 = vrot.slane %v973_v0, 2  ;;  %v953_v39 = vadd.f32 %v952_v29, %v951_v17 }
 0x204   : > { %v945_v49 = vmax.f32 %v937_v45, 0.0  ;;  %v975_v23 = vadd.f32 %v974_v9, %v973_v0 }
 0x205   : > { %v599_v52 = vpop.f32.mrf.mxu1 }
 0x206   : > { %v978_v56 = vrot.slane %v945_v49, 4  ;;  %v613_v54 = vadd.f32 %v1660_v57, %v599_v52  ;;  %v976_v33 = vrot.slane %v975_v23, 1 }
 0x208   : > { %v767_v62 = vadd.f32 %v756_v50, %v613_v54  ;;  %v979_v2 = vadd.f32 %v978_v56, %v945_v49  ;;  %v977_v43 = vadd.f32 %v976_v33, %v975_v23 }
 0x20a   : > { %v938_v3 = vadd.f32 %v927_v58, %v767_v62  ;;  %v980_v12 = vrot.slane %v979_v2, 2 }
 0x20c   : > { %v946_v7 = vmax.f32 %v938_v3, 0.0  ;;  %v981_v25 = vadd.f32 %v980_v12, %v979_v2 }
 0x20d   : > { %v601_v10 = vpop.f32.mrf.mxu1 }
 0x20e   : > { %v984_v13 = vrot.slane %v946_v7, 4  ;;  %v614_v14 = vadd.f32 %v1660_v57, %v601_v10  ;;  %v1000_v57 = vadd.f32 %v1356_v53, %v999_v21  ;;  %v982_v35 = vrot.slane %v981_v25, 1 }
 0x210   : > { %v985_v19 = vadd.f32 %v984_v13, %v946_v7  ;;  %v768_v20 = vadd.f32 %v758_v15, %v614_v14  ;;  %v1002_v42 = vsel %vm1001_vm4, %v1356_v53, %v1000_v57  ;;  %v983_v45 = vadd.f32 %v982_v35, %v981_v25 }
 0x211   : > { %v1004_v44 = vmul.f32 %v1002_v42, %v959_v34  ;;  %v1005_v47 = vmul.f32 %v1002_v42, %v965_v37  ;;  %v1003_v49 = vmul.f32 %v1002_v42, %v953_v39  ;;  %v1006_v50 = vmul.f32 %v1002_v42, %v971_v40 }
 0x212   : > { %v986_v26 = vrot.slane %v985_v19, 2  ;;  %v939_v27 = vadd.f32 %v929_v22, %v768_v20  ;;  %v1007_v52 = vmul.f32 %v1002_v42, %v977_v43  ;;  %v1008_v55 = vmul.f32 %v1002_v42, %v983_v45 }
 0x213   : > { %v1020_v53 = vsel %vm1019_vm5, %v1004_v44, %v1003_v49 }
 0x214   : > { %v987_v31 = vadd.f32 %v986_v26, %v985_v19  ;;  %v947_v32 = vmax.f32 %v939_v27, 0.0  ;;  %v1022_v54 = vsel %vm1021_vm6, %v1005_v47, %v1020_v53 }
 0x215   : > { %v1024_v60 = vsel %vm1023_vm7, %v1006_v50, %v1022_v54 }
 0x216   : > { %v990_v36 = vrot.slane %v947_v32, 4  ;;  %v988_v38 = vrot.slane %v987_v31, 1  ;;  %v1026_v61 = vsel %vm1025_vm8, %v1007_v52, %v1024_v60 }
 0x217   : > { %v1028_v63 = vsel %vm1027_vm9, %v1008_v55, %v1026_v61 }
 0x218   : > { %v991_v41 = vadd.f32 %v990_v36, %v947_v32  ;;  %v989_v48 = vadd.f32 %v988_v38, %v987_v31 }
 0x21a   : > { %v992_v46 = vrot.slane %v991_v41, 2  ;;  %v1009_v58 = vmul.f32 %v1002_v42, %v989_v48 }
 0x21c   : > { %v993_v51 = vadd.f32 %v992_v46, %v991_v41  ;;  %v1030_v0 = vsel %vm1029_vm11, %v1009_v58, %v1028_v63 }
 0x21e   : > { %v994_v56 = vrot.slane %v993_v51, 1 }
 0x220   : > { %v995_v59 = vadd.f32 %v994_v56, %v993_v51 }
 0x222   : > { %v1010_v62 = vmul.f32 %v1002_v42, %v995_v59 }
 0x224   : > { %v1032_v1 = vsel %vm1031_vm12, %v1010_v62, %v1030_v0 }
 0x225   : > { %1034 = vst [vmem:[%s208_s7] sm:$0xff] %v1032_v1 }
 0x226   : > { %1414 = shalt.err (!%p1411_p8)
}
 0x227   : > { %1300 = dma.vmem_to_hbm [thread:$0]  (%p1524_p5), %s1049_s9, 128, %s1051_s10, %s1036_s8  }
 0x228 PF: > { %p1312_p9 = scmp.ge.s32.totalorder %s1453_s18, 2  ;;  %s1062_s23 = sand.u32 1, %s1441_s15  }
 0x229   : > { %s1063_s27 = scalar_lea.sflag [#allocation4], %s1062_s23 }
 0x22a   : > { %p1307_p10 = pnand %p1312_p9, %p1528_p6 }
 0x22c   : > { %p1308_p11 = pneg %p1307_p10 }
 0x22e   : > { %1436 = dma.done.wait (%p1308_p11), %s1063_s27, 128  }
 0x22f   : > { %1438 = vsyncadd (%p1308_p11), %s1063_s27, 4294967168  ;;  %p15_p12 = scmp.ge.s32.totalorder %s1511_s21, 4   ;;  %s1718_s15 = smov %s1445_s16 }
 0x230   : > { %s1719_s16 = smov %s1449_s17  ;;  %s1720_s17 = smov %s1522_s24 }
 0x231   : > { %s1721_s18 = smov %s1511_s21  ;;  %17 = sbr.rel (!%p15_p12) target bundleno = 4 (0x4), region = 78 }
 0x236   :  { %1069 = vsyncpa [#allocation3], 1 }
 0x237   :  { %1071 = vsyncpa [#allocation3 + $0x1], 1 }
 0x238   :  { %1072 = vsyncpa [#allocation4], 1 }
 0x239   :  { %1074 = vsyncpa [#allocation4 + $0x1], 1 }

</bundles_post_ra>
